<compile_context>
chip_gen: v7x
topology: tpu7x:2x2x1
jax: 0.10.0
libtpu: 0.0.40
codegen_flags: <defaults>
</compile_context>

<pallas_src>
import jax
import jax.numpy as jnp
from jax.experimental import pallas as pl
from jax.experimental.pallas import tpu as pltpu

_EPS = 1e-07
_LANE = 128
_SUBLANE = 8


def _rmse_kernel(nrows_ref, yhat_ref, y_ref, out_ref, acc_ref):
    i = pl.program_id(0)
    br = yhat_ref.shape[0]

    # init the vector accumulator on the first grid step
    @pl.when(i == 0)
    def _():
        acc_ref[...] = jnp.zeros_like(acc_ref)

    d = yhat_ref[...].astype(jnp.float32) - y_ref[...].astype(jnp.float32)
    sq = d * d

    # mask rows beyond the real array (garbage rows of a partial last block)
    row_ids = i * br + jax.lax.broadcasted_iota(jnp.int32, (br, _LANE), 0)
    sq = jnp.where(row_ids < nrows_ref[0], sq, 0.0)

    # fold the (br, 128) tile into one (8, 128) vreg: VPU adds only
    acc_ref[...] += jnp.sum(sq.reshape(br // _SUBLANE, _SUBLANE, _LANE), axis=0)

    # finalize: single cross-lane reduce + sqrt(sum + eps) on the last step
    @pl.when(i == pl.num_programs(0) - 1)
    def _():
        out_ref[0, 0] = jnp.sqrt(jnp.sum(acc_ref[...]) + jnp.float32(_EPS))


def rmse_loss(yhat, y, *, block_rows=1024):
    assert yhat.shape == y.shape, "yhat and y must have the same shape"
    yf = yhat.reshape(-1)
    ys = y.reshape(-1)
    n = yf.shape[0]

    # pad with at most 8*128-1 zeros so the flat vector reshapes to a
    # (rows, 128) slab with rows a multiple of 8 (tile-size independent).
    chunk = _SUBLANE * _LANE
    padded = pl.cdiv(n, chunk) * chunk
    pad = padded - n
    if pad:
        yf = jnp.pad(yf, (0, pad))
        ys = jnp.pad(ys, (0, pad))

    rows = padded // _LANE  # multiple of 8
    yf2 = yf.reshape(rows, _LANE)
    ys2 = ys.reshape(rows, _LANE)

    # row tile: multiple of 8 sublanes, never larger than the array itself
    br = ((block_rows + _SUBLANE - 1) // _SUBLANE) * _SUBLANE
    br = min(br, rows)
    grid = (pl.cdiv(rows, br),)

    nrows = jnp.array([rows], dtype=jnp.int32)

    out = pl.pallas_call(
        _rmse_kernel,
        out_shape=jax.ShapeDtypeStruct((1, 1), jnp.float32),
        grid_spec=pltpu.PrefetchScalarGridSpec(
            num_scalar_prefetch=1,
            grid=grid,
            in_specs=[
                pl.BlockSpec((br, _LANE), lambda i, nrows_ref: (i, 0)),
                pl.BlockSpec((br, _LANE), lambda i, nrows_ref: (i, 0)),
            ],
            out_specs=pl.BlockSpec(memory_space=pltpu.SMEM),
            scratch_shapes=[pltpu.VMEM((_SUBLANE, _LANE), jnp.float32)],
        ),
        compiler_params=pltpu.CompilerParams(
            dimension_semantics=("arbitrary",),  # sequential reduction axis
        ),
    )(nrows, yf2, ys2)
    return out[0, 0]


if __name__ == "__main__":
    key = jax.random.PRNGKey(0)
    k1, k2 = jax.random.split(key)

    # RMSELoss takes arbitrary same-shaped predictions/targets; small
    # NCHW-like example shape.
    yhat = jax.random.normal(k1, (2, 4, 16, 16), dtype=jnp.float32)
    y = jax.random.normal(k2, (2, 4, 16, 16), dtype=jnp.float32)

    loss = jax.block_until_ready(rmse_loss(yhat, y))
    ref = jnp.sqrt(jnp.sum((yhat - y) ** 2) + _EPS)
    assert jnp.allclose(loss, ref, rtol=1e-5, atol=1e-5), (loss, ref)

    # unaligned shape + small tile: exercises the 128-lane pad, multi-step
    # accumulation and the partial-last-block row masking path.
    k3, k4 = jax.random.split(k2)
    a = jax.random.normal(k3, (3, 1000), dtype=jnp.float32)   # 3000 elems -> 24 rows
    b = jax.random.normal(k4, (3, 1000), dtype=jnp.float32)
    loss2 = jax.block_until_ready(rmse_loss(a, b, block_rows=16))
    ref2 = jnp.sqrt(jnp.sum((a - b) ** 2) + _EPS)
    assert jnp.allclose(loss2, ref2, rtol=1e-5, atol=1e-5), (loss2, ref2)

    print("KERNEL_OK")
</pallas_src>

<mosaic_0001>
module attributes {stable_mosaic.version = 11 : i64} {
  func.func @_rmse_kernel(%arg0: i32, %arg1: memref<1xi32, #tpu.memory_space<smem>>, %arg2: memref<16x128xf32, #tpu.memory_space<vmem>>, %arg3: memref<16x128xf32, #tpu.memory_space<vmem>>, %arg4: memref<1x1xf32, #tpu.memory_space<smem>>, %arg5: memref<8x128xf32, #tpu.memory_space<vmem>>) attributes {dimension_semantics = [#tpu.dimension_semantics<arbitrary>], iteration_bounds = array<i64: 1>, scalar_prefetch = 1 : i64, scratch_operands = 1 : i64, tpu.core_type = #tpu.core_type<tc>, window_params = [{transform_indices = @transform_0, window_bounds = array<i64: 16, 128>}, {transform_indices = @transform_1, window_bounds = array<i64: 16, 128>}, {transform_indices = @transform_2, window_bounds = array<i64: 1, 1>}]} {
    %c0_i32 = arith.constant 0 : i32
    %0 = arith.cmpi eq, %arg0, %c0_i32 : i32
    %1 = arith.extui %0 : i1 to i32
    %c0_i32_0 = arith.constant 0 : i32
    %2 = arith.cmpi ne, %1, %c0_i32_0 : i32
    scf.if %2 {
      %cst_12 = arith.constant 0.000000e+00 : f32
      %24 = vector.broadcast %cst_12 : f32 to vector<8x128xf32>
      %c0_13 = arith.constant 0 : index
      %c0_14 = arith.constant 0 : index
      %25 = vector.load %arg5[%c0_13, %c0_14] : memref<8x128xf32, #tpu.memory_space<vmem>>, vector<8x128xf32>
      tpu.vector_store %arg5[%c0_13, %c0_14], %24 {strides = array<i32>} : memref<8x128xf32, #tpu.memory_space<vmem>>, vector<8x128xf32>,
    } else {
    }
    %c0 = arith.constant 0 : index
    %c0_1 = arith.constant 0 : index
    %3 = vector.load %arg2[%c0, %c0_1] : memref<16x128xf32, #tpu.memory_space<vmem>>, vector<16x128xf32>
    %c0_2 = arith.constant 0 : index
    %c0_3 = arith.constant 0 : index
    %4 = vector.load %arg3[%c0_2, %c0_3] : memref<16x128xf32, #tpu.memory_space<vmem>>, vector<16x128xf32>
    %5 = arith.subf %3, %4 : vector<16x128xf32>
    %6 = arith.mulf %5, %5 : vector<16x128xf32>
    %c16_i32 = arith.constant 16 : i32
    %7 = arith.muli %arg0, %c16_i32 : i32
    %8 = tpu.iota {dimensions = array<i32: 0>} : vector<16x128xi32>
    %9 = vector.broadcast %7 : i32 to vector<16x128xi32>
    %10 = arith.addi %9, %8 : vector<16x128xi32>
    %c0_4 = arith.constant 0 : index
    %11 = memref.load %arg1[%c0_4] : memref<1xi32, #tpu.memory_space<smem>>
    %12 = vector.broadcast %11 : i32 to vector<16x128xi32>
    %13 = arith.cmpi slt, %10, %12 : vector<16x128xi32>
    %cst = arith.constant 0.000000e+00 : f32
    %14 = vector.broadcast %cst : f32 to vector<16x128xf32>
    %15 = arith.select %13, %6, %14 : vector<16x128xi1>, vector<16x128xf32>
    %c0_5 = arith.constant 0 : index
    %c0_6 = arith.constant 0 : index
    %16 = vector.load %arg5[%c0_5, %c0_6] : memref<8x128xf32, #tpu.memory_space<vmem>>, vector<8x128xf32>
    %17 = vector.shape_cast %15 : vector<16x128xf32> to vector<2x8x128xf32>
    %cst_7 = arith.constant dense<0.000000e+00> : vector<8x128xf32>
    %18 = vector.multi_reduction <add>, %17, %cst_7 [0] : vector<2x8x128xf32> to vector<8x128xf32>
    %19 = arith.addf %16, %18 : vector<8x128xf32>
    %c0_8 = arith.constant 0 : index
    %c0_9 = arith.constant 0 : index
    %20 = vector.load %arg5[%c0_8, %c0_9] : memref<8x128xf32, #tpu.memory_space<vmem>>, vector<8x128xf32>
    tpu.vector_store %arg5[%c0_8, %c0_9], %19 {strides = array<i32>} : memref<8x128xf32, #tpu.memory_space<vmem>>, vector<8x128xf32>,
    %c0_i32_10 = arith.constant 0 : i32
    %21 = arith.cmpi eq, %arg0, %c0_i32_10 : i32
    %22 = arith.extui %21 : i1 to i32
    %c0_i32_11 = arith.constant 0 : i32
    %23 = arith.cmpi ne, %22, %c0_i32_11 : i32
    scf.if %23 {
      %c0_12 = arith.constant 0 : index
      %c0_13 = arith.constant 0 : index
      %24 = vector.load %arg5[%c0_12, %c0_13] : memref<8x128xf32, #tpu.memory_space<vmem>>, vector<8x128xf32>
      %25 = vector.shape_cast %24 : vector<8x128xf32> to vector<1x8x128xf32>
      %cst_14 = arith.constant dense<0.000000e+00> : vector<1xf32>
      %26 = vector.multi_reduction <add>, %25, %cst_14 [1, 2] : vector<1x8x128xf32> to vector<1xf32>
      %27 = vector.shape_cast %26 : vector<1xf32> to vector<1x1x1xf32>
      %28 = vector.extract %27[0, 0, 0] : f32 from vector<1x1x1xf32>
      %cst_15 = arith.constant 1.000000e-07 : f32
      %29 = arith.addf %28, %cst_15 : f32
      %30 = math.sqrt %29 : f32
      %c0_16 = arith.constant 0 : index
      %c0_17 = arith.constant 0 : index
      %31 = memref.load %arg4[%c0_16, %c0_17] : memref<1x1xf32, #tpu.memory_space<smem>>
      memref.store %30, %arg4[%c0_16, %c0_17] : memref<1x1xf32, #tpu.memory_space<smem>>
    } else {
    }
    return
  }
  func.func @transform_0(%arg0: i32, %arg1: memref<1xi32, #tpu.memory_space<smem>>) -> (i32, i32) {
    %c0_i32 = arith.constant 0 : i32
    %c0_i32_0 = arith.constant 0 : i32
    return %arg0, %c0_i32 : i32, i32
  }
  func.func @transform_1(%arg0: i32, %arg1: memref<1xi32, #tpu.memory_space<smem>>) -> (i32, i32) {
    %c0_i32 = arith.constant 0 : i32
    %c0_i32_0 = arith.constant 0 : i32
    return %arg0, %c0_i32 : i32, i32
  }
  func.func @transform_2(%arg0: i32, %arg1: memref<1xi32, #tpu.memory_space<smem>>) -> (i32, i32) {
    %c0_i32 = arith.constant 0 : i32
    %c0_i32_0 = arith.constant 0 : i32
    %c0_i32_1 = arith.constant 0 : i32
    return %c0_i32, %c0_i32_0 : i32, i32
  }
}

</mosaic_0001>

<bundles_post_ra>
// kernel: tpu_custom_call.1
= control target key start
LH: loop header
LB: loop body
LE: loop exit
PB: predicated region body
PF: predicated region fallthrough
CT: control target
= control target key end

     0   :  { %9 = vsyncpa [#allocation6], 0  ;;  %s247_s0 = inlined_call_operand.<no memory space> [shape: s32[1], index: 0, kind: input, shape index: {}]   ;;  %s248_s1 = inlined_call_operand.hbm [shape: f32[16,128], index: 1, kind: input, shape index: {}]   ;;  %s249_s2 = inlined_call_operand.hbm [shape: f32[16,128], index: 2, kind: input, shape index: {}]   ;;  %s250_s3 = inlined_call_operand.hbm [shape: f32[1,1], index: 3, kind: output, shape index: {}]  }
   0x1   :  { %10 = vsyncpa [#allocation9], 0 }
   0x2   :  { %11 = vsyncpa [#allocation7], 0  ;;  %s183_s12 = smov [#allocation5]   ;;  %s123_s16 = scalar_lea.hbm %s248_s1, 256 }
   0x3   :  { %s17_s13 = sshll.u32 %s183_s12, 4  ;;  %p124_p0 = scmp.ne.s32.totalorder %s248_s1, %s123_s16  ;;  %s18_s13 = int_to_ptr.vmem [resolvable:$true] %s17_s13 }
   0x4   :  { %p127_p1 = scmp.lt.u32.totalorder %s123_s16, %s248_s1 }
   0x6   :  { %p129_p2 = pnand %p127_p1, %p124_p0 }
   0x8   :  { %132 = shalt.err (!%p129_p2)
}
   0x9   :  { %s133_s21 = scalar_lea.vmem %s18_s13, 256  ;;  %p138_p4 = scmp.lt.s32.totalorder %s18_s13, %s18_s13 }
   0xa   :  { %p134_p3 = scmp.ne.s32.totalorder %s18_s13, %s133_s21  ;;  %p139_p5 = scmp.lt.s32.totalorder %s133_s21, %s133_s21 }
   0xc   :  { %p140_p6 = por %p139_p5, %p138_p4 }
   0xe   :  { %p141_p7 = pnand %p140_p6, %p134_p3 }
  0x10   :  { %144 = shalt.err (!%p141_p7)
}
  0x11   :  { %s184_s22 = smov 128   ;;  %s185_s23 = smov 8  }
  0x12   :  { %23 = dma.hbm_to_vmem [thread:$0]  %s248_s1, 256, %s18_s13, [#allocation6], %s184_s22, %s184_s22, %s185_s23  }
  0x13   :  { %s186_s26 = smov [#allocation8]   ;;  %s145_s30 = scalar_lea.hbm %s249_s2, 256 }
  0x14   :  { %s29_s27 = sshll.u32 %s186_s26, 4  ;;  %p146_p8 = scmp.ne.s32.totalorder %s249_s2, %s145_s30  ;;  %s30_s27 = int_to_ptr.vmem [resolvable:$true] %s29_s27 }
  0x15   :  { %p149_p9 = scmp.lt.u32.totalorder %s145_s30, %s249_s2 }
  0x17   :  { %p151_p10 = pnand %p149_p9, %p146_p8 }
  0x19   :  { %154 = shalt.err (!%p151_p10)
}
  0x1a   :  { %s155_s8 = scalar_lea.vmem %s30_s27, 256  ;;  %p160_p12 = scmp.lt.s32.totalorder %s30_s27, %s30_s27 }
  0x1b   :  { %p156_p11 = scmp.ne.s32.totalorder %s30_s27, %s155_s8  ;;  %p161_p13 = scmp.lt.s32.totalorder %s155_s8, %s155_s8 }
  0x1d   :  { %p162_p0 = por %p161_p13, %p160_p12 }
  0x1f   :  { %p163_p1 = pnand %p162_p0, %p156_p11 }
  0x21   :  { %166 = shalt.err (!%p163_p1)
}
  0x22   :  { %35 = dma.hbm_to_vmem [thread:$0]  %s249_s2, 256, %s30_s27, [#allocation9], %s184_s22, %s184_s22, %s185_s23  }
  0x23   :  { %177 = dma.done.wait [#allocation6], 256  }
  0x24   :  { %178 = vsyncadd [#allocation6], 4294967040 }
  0x25   :  { %179 = dma.done.wait [#allocation9], 256  }
  0x26   :  { %180 = vsyncadd [#allocation9], 4294967040  ;;  %v56_v0 = vlaneseq  ;;  %v63_v3 = vstv %s247_s0  ;;  %v47_v4 = vld [vmem:[#allocation5] sm:$0xff]  ;;  %v48_v5 = vld [vmem:[#allocation5 + $0x8] sm:$0xff]  ;;  %s167_s15 = scalar_lea.hbm %s250_s3, 16 }
  0x27   :  { %v49_v6 = vld [vmem:[#allocation8] sm:$0xff]  ;;  %v50_v7 = vld [vmem:[#allocation8 + $0x8] sm:$0xff]  ;;  %p168_p2 = scmp.ne.s32.totalorder %s250_s3, %s167_s15  ;;  %p171_p3 = scmp.lt.u32.totalorder %s167_s15, %s250_s3 }
  0x28   :  { %v57_v1 = vshrl.u32 %v56_v0, 7  ;;  %v51_v8 = vsub.f32 %v47_v4, %v49_v6  ;;  %v52_v9 = vsub.f32 %v48_v5, %v50_v7 }
  0x29   :  { %p173_p4 = pnand %p171_p3, %p168_p2 }
  0x2a   :  { %v58_v2 = vadd.s32 8, %v57_v1  ;;  %vm64_vm0 = vcmp.lt.s32.totalorder %v57_v1, %v63_v3  ;;  %v53_v10 = vmul.f32 %v51_v8, %v51_v8  ;;  %v54_v11 = vmul.f32 %v52_v9, %v52_v9 }
  0x2c   :  { %vm65_vm1 = vcmp.lt.s32.totalorder %v58_v2, %v63_v3  ;;  %v66_v12 = vsel %vm64_vm0, %v53_v10, 0.0 }
  0x2d   :  { %v67_v13 = vsel %vm65_vm1, %v54_v11, 0.0 }
  0x2e   :  { %v69_v14 = vadd.f32 %v67_v13, %v66_v12 }
  0x30   :  { %76 = vadd.xlane.f32.xlu0 %v69_v14 }
  0xbd   :  { %v77_v15 = vpop.xlane.xlu0 %76 }
  0xbe   :  { %v78_v16 = vrot.slane %v77_v15, 4 }
  0xc0   :  { %v79_v17 = vadd.f32 %v78_v16, %v77_v15 }
  0xc2   :  { %v80_v18 = vrot.slane %v79_v17, 2 }
  0xc4   :  { %v81_v19 = vadd.f32 %v80_v18, %v79_v17 }
  0xc6   :  { %v82_v20 = vrot.slane %v81_v19, 1 }
  0xc8   :  { %v83_v21 = vadd.f32 %v82_v20, %v81_v19 }
  0xca   :  { %112 = vpush %v83_v21 }
  0xfb   :  { %s113_s0 = spop %112 }
  0xfc   :  { %s85_s2 = sadd.f32 1e-07, %s113_s0 }
  0xfe   :  { %v86_v22 = vstv %s85_s2 }
  0xff   :  { %121 = vrsqrt.f32 %v86_v22  ;;  %vm89_vm2 = vcmp.eq.f32.partialorder %v86_v22, inf  ;;  %v92_v25 = vand.u32 2147483648, %v86_v22  ;;  %vm91_vm3 = vcmp.eq.f32.partialorder %v86_v22, 0.0 }
 0x109   :  { %v122_v23 = vpop.eup %121 }
 0x10a   :  { %v88_v24 = vmul.f32 %v122_v23, %v86_v22 }
 0x10c   :  { %v90_v26 = vsel %vm89_vm2, %v86_v22, %v88_v24 }
 0x10d   :  { %v93_v27 = vsel %vm91_vm3, %v92_v25, %v90_v26 }
 0x10e   :  { %114 = vpush %v93_v27 }
 0x13f   :  { %s115_s12 = spop %114 }
 0x140   :  { %96 = sst [smem:[#allocation10]] %s115_s12 }
 0x141   :  { %176 = shalt.err (!%p173_p4)
}
 0x142   :  { %s187_s20 = smov [#allocation10]  }
 0x143   :  { %104 = dma.smem_to_hbm %s187_s20, 16, %s250_s3, [#allocation7]  }
 0x144   :  { %181 = dma.done.wait [#allocation7], 16  }
 0x145   :  { %182 = vsyncadd [#allocation7], 4294967280 }
 0x146   :  { %108 = sfence }
 0x147   :  { %109 = vsyncpa [#allocation6], 1 }
 0x148   :  { %110 = vsyncpa [#allocation9], 1 }
 0x149   :  { %111 = vsyncpa [#allocation7], 1 }

</bundles_post_ra>
